<compile_context>
chip_gen: v6e
topology: v6e:2x2x1
jax: 0.10.0
libtpu: 0.0.40
codegen_flags: <defaults>
</compile_context>

<pallas_src>
import jax
import jax.numpy as jnp
from jax.experimental import pallas as pl
from jax.experimental.pallas import tpu as pltpu

HIDDEN = 256


def _densenet_kernel(x_ref, w1_ref, b1_ref, w2_ref, b2_ref, o_ref):
    # x_ref:  (tb, D_pad)    f32
    # w1_ref: (D_pad, 256)   f32
    # b1_ref: (1, 256)       f32
    # w2_ref: (256, C_pad)   f32
    # b2_ref: (1, C_pad)     f32  (padded classes carry -1e9)
    # o_ref:  (tb, C_pad)    f32
    x = x_ref[...]

    # fc1 + ReLU  (MXU matmul, VPU max)
    h = jnp.dot(x, w1_ref[...], preferred_element_type=jnp.float32) + b1_ref[...]
    h = jnp.maximum(h, 0.0)

    # dropout: identity in inference mode (see TODO(synk) above).

    # fc3  (MXU matmul)
    logits = jnp.dot(h, w2_ref[...], preferred_element_type=jnp.float32) + b2_ref[...]

    # softmax over the class (lane) axis; padded classes hold -1e9 -> exp == 0.
    m = jnp.max(logits, axis=1, keepdims=True)     # XLU reduce
    e = jnp.exp(logits - m)                        # EUP
    s = jnp.sum(e, axis=1, keepdims=True)          # XLU reduce
    o_ref[...] = e / s


def _round_up(v, m):
    return ((v + m - 1) // m) * m


@jax.jit
def densenet_forward(x, w1, b1, w2, b2):
    """x: (B, D) f32; w1: (D, 256); b1: (256,); w2: (256, C); b2: (C,)."""
    B, D = x.shape
    C = w2.shape[1]

    # Batch tile: as big as the batch allows (up to 512 rows) -> fewer grid
    # steps, taller MXU LHS tiles; still multiple of 8 (sublane-dense).
    block_b = min(_round_up(max(B, 8), 8), 512)

    # Lane/sublane-dense padding (wrapper-side layout plumbing).
    B_pad = _round_up(max(B, block_b), block_b)
    D_pad = _round_up(max(D, 128), 128)
    C_pad = _round_up(max(C, 128), 128)

    xf = jnp.zeros((B_pad, D_pad), jnp.float32).at[:B, :D].set(x.astype(jnp.float32))
    w1f = jnp.zeros((D_pad, HIDDEN), jnp.float32).at[:D, :].set(w1.astype(jnp.float32))
    b1f = b1.astype(jnp.float32).reshape(1, HIDDEN)
    w2f = jnp.zeros((HIDDEN, C_pad), jnp.float32).at[:, :C].set(w2.astype(jnp.float32))
    # Padded class logits get a large negative bias -> exp underflows to 0.
    b2f = jnp.full((1, C_pad), -1e9, jnp.float32).at[0, :C].set(b2.astype(jnp.float32))

    grid = (B_pad // block_b,)

    flops = 2 * B_pad * D_pad * HIDDEN + 2 * B_pad * HIDDEN * C_pad
    bytes_accessed = 4 * (
        B_pad * D_pad + D_pad * HIDDEN + HIDDEN + HIDDEN * C_pad + C_pad + B_pad * C_pad
    )

    out = pl.pallas_call(
        _densenet_kernel,
        out_shape=jax.ShapeDtypeStruct((B_pad, C_pad), jnp.float32),
        grid=grid,
        in_specs=[
            pl.BlockSpec((block_b, D_pad), lambda i: (i, 0)),
            pl.BlockSpec((D_pad, HIDDEN), lambda i: (0, 0)),   # resident across grid
            pl.BlockSpec((1, HIDDEN), lambda i: (0, 0)),
            pl.BlockSpec((HIDDEN, C_pad), lambda i: (0, 0)),   # resident across grid
            pl.BlockSpec((1, C_pad), lambda i: (0, 0)),
        ],
        out_specs=pl.BlockSpec((block_b, C_pad), lambda i: (i, 0)),
        compiler_params=pltpu.CompilerParams(
            dimension_semantics=("parallel",),
        ),
        cost_estimate=pl.CostEstimate(
            flops=flops, transcendentals=B_pad * C_pad, bytes_accessed=bytes_accessed
        ),
    )(xf, w1f, b1f, w2f, b2f)

    return out[:B, :C]


def _reference(x, w1, b1, w2, b2):
    h = jnp.maximum(x @ w1 + b1, 0.0)
    logits = h @ w2 + b2
    return jax.nn.softmax(logits, axis=1)


if __name__ == "__main__":
    key = jax.random.PRNGKey(0)
    kx, k1, kb1, k2, kb2 = jax.random.split(key, 5)

    B, D, C = 8, 32, 10  # batch, input_size, num_classes
    x = jax.random.normal(kx, (B, D), dtype=jnp.float32)
    # Xavier-uniform-ish init (exact init scheme irrelevant to the forward pass).
    lim1 = (6.0 / (D + HIDDEN)) ** 0.5
    lim2 = (6.0 / (HIDDEN + C)) ** 0.5
    w1 = jax.random.uniform(k1, (D, HIDDEN), jnp.float32, -lim1, lim1)
    b1 = jax.random.uniform(kb1, (HIDDEN,), jnp.float32, -0.1, 0.1)
    w2 = jax.random.uniform(k2, (HIDDEN, C), jnp.float32, -lim2, lim2)
    b2 = jax.random.uniform(kb2, (C,), jnp.float32, -0.1, 0.1)

    out = densenet_forward(x, w1, b1, w2, b2)
    out = jax.block_until_ready(out)

    ref = _reference(x, w1, b1, w2, b2)
    assert out.shape == (B, C), out.shape
    assert jnp.allclose(out, ref, atol=1e-4, rtol=1e-4), (out, ref)
    # softmax rows must sum to 1
    assert jnp.allclose(jnp.sum(out, axis=1), 1.0, atol=1e-4)
    print("KERNEL_OK")
</pallas_src>

<mosaic_0001>
module attributes {stable_mosaic.version = 11 : i64} {
  func.func @_densenet_kernel(%arg0: i32, %arg1: memref<8x128xf32, #tpu.memory_space<vmem>>, %arg2: memref<128x256xf32, #tpu.memory_space<vmem>>, %arg3: memref<1x256xf32, #tpu.memory_space<vmem>>, %arg4: memref<256x128xf32, #tpu.memory_space<vmem>>, %arg5: memref<1x128xf32, #tpu.memory_space<vmem>>, %arg6: memref<8x128xf32, #tpu.memory_space<vmem>>) attributes {dimension_semantics = [#tpu.dimension_semantics<parallel>], iteration_bounds = array<i64: 1>, scalar_prefetch = 0 : i64, scratch_operands = 0 : i64, tpu.core_type = #tpu.core_type<tc>, window_params = [{transform_indices = @transform_0, window_bounds = array<i64: 8, 128>}, {pipeline_mode = #tpu.pipeline_mode<synchronous>, transform_indices = @transform_1, window_bounds = array<i64: 128, 256>}, {pipeline_mode = #tpu.pipeline_mode<synchronous>, transform_indices = @transform_2, window_bounds = array<i64: 1, 256>}, {pipeline_mode = #tpu.pipeline_mode<synchronous>, transform_indices = @transform_3, window_bounds = array<i64: 256, 128>}, {pipeline_mode = #tpu.pipeline_mode<synchronous>, transform_indices = @transform_4, window_bounds = array<i64: 1, 128>}, {transform_indices = @transform_5, window_bounds = array<i64: 8, 128>}]} {
    %c0 = arith.constant 0 : index
    %c0_0 = arith.constant 0 : index
    %0 = vector.load %arg1[%c0, %c0_0] : memref<8x128xf32, #tpu.memory_space<vmem>>, vector<8x128xf32>
    %c0_1 = arith.constant 0 : index
    %c0_2 = arith.constant 0 : index
    %1 = vector.load %arg2[%c0_1, %c0_2] : memref<128x256xf32, #tpu.memory_space<vmem>>, vector<128x256xf32>
    %cst = arith.constant dense<0.000000e+00> : vector<8x256xf32>
    %2 = tpu.matmul %0, %1, %cst {dimension_numbers = #tpu.dot_dimension_numbers<[1], [0], [0], [1], [0, 0, 1, 1], [], []>} : vector<8x128xf32>, vector<128x256xf32>, vector<8x256xf32> -> vector<8x256xf32>
    %c0_3 = arith.constant 0 : index
    %c0_4 = arith.constant 0 : index
    %3 = vector.load %arg3[%c0_3, %c0_4] : memref<1x256xf32, #tpu.memory_space<vmem>>, vector<1x256xf32>
    %4 = vector.broadcast %3 : vector<1x256xf32> to vector<8x256xf32>
    %5 = arith.addf %2, %4 : vector<8x256xf32>
    %cst_5 = arith.constant 0.000000e+00 : f32
    %6 = vector.broadcast %cst_5 : f32 to vector<8x256xf32>
    %7 = arith.maximumf %5, %6 : vector<8x256xf32>
    %c0_6 = arith.constant 0 : index
    %c0_7 = arith.constant 0 : index
    %8 = vector.load %arg4[%c0_6, %c0_7] : memref<256x128xf32, #tpu.memory_space<vmem>>, vector<256x128xf32>
    %cst_8 = arith.constant dense<0.000000e+00> : vector<8x128xf32>
    %9 = tpu.matmul %7, %8, %cst_8 {dimension_numbers = #tpu.dot_dimension_numbers<[1], [0], [0], [1], [0, 0, 1, 1], [], []>} : vector<8x256xf32>, vector<256x128xf32>, vector<8x128xf32> -> vector<8x128xf32>
    %c0_9 = arith.constant 0 : index
    %c0_10 = arith.constant 0 : index
    %10 = vector.load %arg5[%c0_9, %c0_10] : memref<1x128xf32, #tpu.memory_space<vmem>>, vector<1x128xf32>
    %11 = vector.broadcast %10 : vector<1x128xf32> to vector<8x128xf32>
    %12 = arith.addf %9, %11 : vector<8x128xf32>
    %cst_11 = arith.constant dense<0xFF800000> : vector<8xf32>
    %13 = vector.multi_reduction <maximumf>, %12, %cst_11 [1] : vector<8x128xf32> to vector<8xf32>
    %14 = vector.shape_cast %13 : vector<8xf32> to vector<8x1xf32>
    %15 = vector.broadcast %14 : vector<8x1xf32> to vector<8x128xf32>
    %16 = arith.subf %12, %15 : vector<8x128xf32>
    %17 = math.exp %16 : vector<8x128xf32>
    %cst_12 = arith.constant dense<0.000000e+00> : vector<8xf32>
    %18 = vector.multi_reduction <add>, %17, %cst_12 [1] : vector<8x128xf32> to vector<8xf32>
    %19 = vector.shape_cast %18 : vector<8xf32> to vector<8x1xf32>
    %20 = vector.broadcast %19 : vector<8x1xf32> to vector<8x128xf32>
    %21 = arith.divf %17, %20 : vector<8x128xf32>
    %c0_13 = arith.constant 0 : index
    %c0_14 = arith.constant 0 : index
    %22 = vector.load %arg6[%c0_13, %c0_14] : memref<8x128xf32, #tpu.memory_space<vmem>>, vector<8x128xf32>
    tpu.vector_store %arg6[%c0_13, %c0_14], %21 {strides = array<i32>} : memref<8x128xf32, #tpu.memory_space<vmem>>, vector<8x128xf32>,
    return
  }
  func.func @transform_0(%arg0: i32) -> (i32, i32) {
    %c0_i32 = arith.constant 0 : i32
    %c0_i32_0 = arith.constant 0 : i32
    return %arg0, %c0_i32 : i32, i32
  }
  func.func @transform_1(%arg0: i32) -> (i32, i32) {
    %c0_i32 = arith.constant 0 : i32
    %c0_i32_0 = arith.constant 0 : i32
    %c0_i32_1 = arith.constant 0 : i32
    return %c0_i32, %c0_i32_0 : i32, i32
  }
  func.func @transform_2(%arg0: i32) -> (i32, i32) {
    %c0_i32 = arith.constant 0 : i32
    %c0_i32_0 = arith.constant 0 : i32
    %c0_i32_1 = arith.constant 0 : i32
    return %c0_i32, %c0_i32_0 : i32, i32
  }
  func.func @transform_3(%arg0: i32) -> (i32, i32) {
    %c0_i32 = arith.constant 0 : i32
    %c0_i32_0 = arith.constant 0 : i32
    %c0_i32_1 = arith.constant 0 : i32
    return %c0_i32, %c0_i32_0 : i32, i32
  }
  func.func @transform_4(%arg0: i32) -> (i32, i32) {
    %c0_i32 = arith.constant 0 : i32
    %c0_i32_0 = arith.constant 0 : i32
    %c0_i32_1 = arith.constant 0 : i32
    return %c0_i32, %c0_i32_0 : i32, i32
  }
  func.func @transform_5(%arg0: i32) -> (i32, i32) {
    %c0_i32 = arith.constant 0 : i32
    %c0_i32_0 = arith.constant 0 : i32
    return %arg0, %c0_i32 : i32, i32
  }
}

</mosaic_0001>

<bundles_post_ra>
// kernel: densenet_forward.1
= control target key start
LH: loop header
LB: loop body
LE: loop exit
PB: predicated region body
PF: predicated region fallthrough
CT: control target
= control target key end

     0   :  { %v336_v4 = vmov 0.0   ;;  %s572_s0 = inlined_call_operand.vmem [shape: f32[8,128], index: 0, kind: input, shape index: {}]   ;;  %s573_s1 = inlined_call_operand.vmem [shape: f32[128,256], index: 1, kind: input, shape index: {}]   ;;  %s574_s2 = inlined_call_operand.vmem [shape: f32[1,256], index: 2, kind: input, shape index: {}]   ;;  %s575_s3 = inlined_call_operand.vmem [shape: f32[256,128], index: 3, kind: input, shape index: {}]   ;;  %s576_s4 = inlined_call_operand.vmem [shape: f32[1,128], index: 4, kind: input, shape index: {}]   ;;  %s577_s5 = inlined_call_operand.hbm [shape: f32[8,128], index: 5, kind: output, shape index: {}]  }
   0x1   :  { %v53_v0 = vld [vmem:[%s573_s1 + $0xf8] sm:$0xff]  ;;  %v52_v1 = vld [vmem:[%s573_s1 + $0xf0] sm:$0xff]  ;;  %v51_v2 = vld [vmem:[%s573_s1 + $0xe8] sm:$0xff]  ;;  %130 = vmatprep.mubr.f32.mxu0 %v336_v4 }
   0x2   :  { %66 = vmatprep.subr.mxu0 %v53_v0  ;;  %v50_v3 = vld [vmem:[%s573_s1 + $0xe0] sm:$0xff]  ;;  %v49_v5 = vld [vmem:[%s573_s1 + $0xd8] sm:$0xff]  ;;  %v48_v6 = vld [vmem:[%s573_s1 + $0xd0] sm:$0xff] }
   0x3   :  { %67 = vmatpush1.msra.mxu0 %v52_v1  ;;  %v47_v7 = vld [vmem:[%s573_s1 + $0xc8] sm:$0xff]  ;;  %v46_v8 = vld [vmem:[%s573_s1 + $0xc0] sm:$0xff]  ;;  %v45_v9 = vld [vmem:[%s573_s1 + $0xb8] sm:$0xff] }
   0x4   :  { %68 = vmatprep.subr.mxu0 %v51_v2  ;;  %v44_v10 = vld [vmem:[%s573_s1 + $0xb0] sm:$0xff]  ;;  %v43_v11 = vld [vmem:[%s573_s1 + $0xa8] sm:$0xff]  ;;  %v42_v12 = vld [vmem:[%s573_s1 + $0xa0] sm:$0xff] }
   0x5   :  { %69 = vmatpush1.msra.mxu0 %v50_v3  ;;  %v41_v13 = vld [vmem:[%s573_s1 + $0x98] sm:$0xff]  ;;  %v40_v14 = vld [vmem:[%s573_s1 + $0x90] sm:$0xff]  ;;  %v39_v18 = vld [vmem:[%s573_s1 + $0x88] sm:$0xff] }
   0x6   :  { %70 = vmatprep.subr.mxu0 %v49_v5  ;;  %v170_v15 = vld [vmem:[%s575_s3 + $0xf8] sm:$0xff]  ;;  %v169_v17 = vld [vmem:[%s575_s3 + $0xf0] sm:$0xff]  ;;  %v38_v20 = vld [vmem:[%s573_s1 + $0x80] sm:$0xff] }
   0x7   :  { %71 = vmatpush1.msra.mxu0 %v48_v6  ;;  %v154_v16 = vld [vmem:[%s575_s3 + $0x78] sm:$0xff]  ;;  %273 = vmatprep.subr.mxu1 %v170_v15  ;;  %v153_v19 = vld [vmem:[%s575_s3 + $0x70] sm:$0xff]  ;;  %v168_v21 = vld [vmem:[%s575_s3 + $0xe8] sm:$0xff] }
   0x8   :  { %72 = vmatprep.subr.mxu0 %v47_v7  ;;  %274 = vmatpush3.msra.mxu1 %v154_v16  ;;  %v37_v22 = vld [vmem:[%s573_s1 + $0x78] sm:$0xff]  ;;  %v152_v23 = vld [vmem:[%s575_s3 + $0x68] sm:$0xff]  ;;  %v36_v24 = vld [vmem:[%s573_s1 + $0x70] sm:$0xff] }
   0x9   :  { %73 = vmatpush1.msra.mxu0 %v46_v8  ;;  %275 = vmatprep.subr.mxu1 %v169_v17  ;;  %v167_v25 = vld [vmem:[%s575_s3 + $0xe0] sm:$0xff]  ;;  %v35_v26 = vld [vmem:[%s573_s1 + $0x68] sm:$0xff]  ;;  %v166_v29 = vld [vmem:[%s575_s3 + $0xd8] sm:$0xff] }
   0xa   :  { %74 = vmatprep.subr.mxu0 %v45_v9  ;;  %276 = vmatpush3.msra.mxu1 %v153_v19  ;;  %v151_v27 = vld [vmem:[%s575_s3 + $0x60] sm:$0xff]  ;;  %v33_v30 = vld [vmem:[%s573_s1 + $0x58] sm:$0xff]  ;;  %v32_v32 = vld [vmem:[%s573_s1 + $0x50] sm:$0xff] }
   0xb   :  { %75 = vmatpush1.msra.mxu0 %v44_v10  ;;  %277 = vmatprep.subr.mxu1 %v168_v21  ;;  %v34_v28 = vld [vmem:[%s573_s1 + $0x60] sm:$0xff]  ;;  %v150_v31 = vld [vmem:[%s575_s3 + $0x58] sm:$0xff]  ;;  %v165_v33 = vld [vmem:[%s575_s3 + $0xd0] sm:$0xff] }
   0xc   :  { %76 = vmatprep.subr.mxu0 %v43_v11  ;;  %278 = vmatpush3.msra.mxu1 %v152_v23 }
   0xd   :  { %77 = vmatpush1.msra.mxu0 %v42_v12  ;;  %279 = vmatprep.subr.mxu1 %v167_v25 }
   0xe   :  { %78 = vmatprep.subr.mxu0 %v41_v13  ;;  %280 = vmatpush3.msra.mxu1 %v151_v27 }
   0xf   :  { %79 = vmatpush1.msra.mxu0 %v40_v14 }
  0x10   :  { %80 = vmatprep.subr.mxu0 %v39_v18 }
  0x11   :  { %81 = vmatpush1.msra.mxu0 %v38_v20 }
  0x12   :  { %82 = vmatprep.subr.mxu0 %v37_v22 }
  0x13   :  { %83 = vmatpush1.msra.mxu0 %v36_v24 }
  0x14   :  { %84 = vmatprep.subr.mxu0 %v35_v26 }
  0x15   :  { %10 = vsyncpa [#allocation3], 0  ;;  %85 = vmatpush1.msra.mxu0 %v34_v28  ;;  %v31_v34 = vld [vmem:[%s573_s1 + $0x48] sm:$0xff]  ;;  %281 = vmatprep.subr.mxu1 %v166_v29  ;;  %v149_v35 = vld [vmem:[%s575_s3 + $0x50] sm:$0xff]  ;;  %v56_v2 = vlaneseq }
  0x16   :  { %86 = vmatprep.subr.mxu0 %v33_v30  ;;  %v30_v36 = vld [vmem:[%s573_s1 + $0x40] sm:$0xff]  ;;  %282 = vmatpush3.msra.mxu1 %v150_v31  ;;  %v164_v37 = vld [vmem:[%s575_s3 + $0xc8] sm:$0xff]  ;;  %v29_v38 = vld [vmem:[%s573_s1 + $0x38] sm:$0xff] }
  0x17   :  { %87 = vmatpush1.msra.mxu0 %v32_v32  ;;  %283 = vmatprep.subr.mxu1 %v165_v33  ;;  %v148_v39 = vld [vmem:[%s575_s3 + $0x48] sm:$0xff]  ;;  %v28_v40 = vld [vmem:[%s573_s1 + $0x30] sm:$0xff]  ;;  %v163_v41 = vld [vmem:[%s575_s3 + $0xc0] sm:$0xff]  ;;  %v57_v3 = vshrl.u32 %v56_v2, 7 }
  0x18   :  { %88 = vmatprep.subr.mxu0 %v31_v34  ;;  %284 = vmatpush3.msra.mxu1 %v149_v35  ;;  %v27_v42 = vld [vmem:[%s573_s1 + $0x28] sm:$0xff]  ;;  %v147_v43 = vld [vmem:[%s575_s3 + $0x40] sm:$0xff]  ;;  %v162_v45 = vld [vmem:[%s575_s3 + $0xb8] sm:$0xff] }
  0x19   :  { %89 = vmatpush1.msra.mxu0 %v30_v36  ;;  %285 = vmatprep.subr.mxu1 %v164_v37  ;;  %v26_v44 = vld [vmem:[%s573_s1 + $0x20] sm:$0xff]  ;;  %v25_v46 = vld [vmem:[%s573_s1 + $0x18] sm:$0xff]  ;;  %v24_v48 = vld [vmem:[%s573_s1 + $0x10] sm:$0xff]  ;;  %v58_v4 = vsub.s32 0, %v57_v3  ;;  %v62_v6 = vsub.s32 1, %v57_v3 }
  0x1a   :  { %90 = vmatprep.subr.mxu0 %v29_v38  ;;  %286 = vmatpush3.msra.mxu1 %v148_v39  ;;  %v146_v47 = vld [vmem:[%s575_s3 + $0x38] sm:$0xff]  ;;  %v161_v49 = vld [vmem:[%s575_s3 + $0xb0] sm:$0xff]  ;;  %v23_v50 = vld [vmem:[%s573_s1 + $0x8] sm:$0xff] }
  0x1b   :  { %91 = vmatpush1.msra.mxu0 %v28_v40  ;;  %287 = vmatprep.subr.mxu1 %v163_v41  ;;  %v145_v51 = vld [vmem:[%s575_s3 + $0x30] sm:$0xff]  ;;  %v22_v52 = vld [vmem:[%s573_s1] sm:$0xff]  ;;  %v160_v53 = vld [vmem:[%s575_s3 + $0xa8] sm:$0xff] }
  0x1c   :  { %92 = vmatprep.subr.mxu0 %v27_v42  ;;  %288 = vmatpush3.msra.mxu1 %v147_v43  ;;  %v21_v54 = vld [vmem:[%s572_s0] sm:$0xff]  ;;  %v144_v55 = vld [vmem:[%s575_s3 + $0x28] sm:$0xff]  ;;  %v158_v58 = vld [vmem:[%s575_s3 + $0x98] sm:$0xff] }
  0x1d   :  { %93 = vmatpush1.msra.mxu0 %v26_v44  ;;  %289 = vmatprep.subr.mxu1 %v162_v45  ;;  %v159_v56 = vld [vmem:[%s575_s3 + $0xa0] sm:$0xff]  ;;  %v142_v59 = vld [vmem:[%s575_s3 + $0x18] sm:$0xff]  ;;  %v157_v60 = vld [vmem:[%s575_s3 + $0x90] sm:$0xff] }
  0x1e   :  { %94 = vmatprep.subr.mxu0 %v25_v46  ;;  %290 = vmatpush3.msra.mxu1 %v146_v47  ;;  %v143_v57 = vld [vmem:[%s575_s3 + $0x20] sm:$0xff]  ;;  %v141_v61 = vld [vmem:[%s575_s3 + $0x10] sm:$0xff]  ;;  %v156_v62 = vld [vmem:[%s575_s3 + $0x88] sm:$0xff] }
  0x1f   :  { %95 = vmatpush1.msra.mxu0 %v24_v48  ;;  %291 = vmatprep.subr.mxu1 %v161_v49  ;;  %v140_v63 = vld [vmem:[%s575_s3 + $0x8] sm:$0xff]  ;;  %v155_v0 = vld [vmem:[%s575_s3 + $0x80] sm:$0xff] }
  0x20   :  { %96 = vmatprep.subr.mxu0 %v23_v50  ;;  %292 = vmatpush3.msra.mxu1 %v145_v51  ;;  %v139_v1 = vld [vmem:[%s575_s3] sm:$0xff] }
  0x21   :  { %97 = vmatpush1.msra.mxu0 %v22_v52  ;;  %293 = vmatprep.subr.mxu1 %v160_v53  ;;  %v54_v5 = vld [vmem:[%s574_s2] sm:$0x3]  ;;  %s337_s2 = smov [#allocation2]  }
  0x22   :  { %131 = vmatmul.mubr.f32.vlgmr.msra.gmra.mxu0 %v21_v54  ;;  %294 = vmatpush3.msra.mxu1 %v144_v55  ;;  %v59_v7 = vrot.slane %v54_v5, %v58_v4  ;;  %v63_v8 = vrot.slane %v54_v5, %v62_v6  ;;  %v272_v17 = vld [vmem:[%s576_s4] ss:$0 sm:$0xff]  ;;  %s264_s24 = sshll.u32 %s337_s2, 4  ;;  %s265_s24 = int_to_ptr.vmem [resolvable:$true] %s264_s24 }
  0x23   :  { %295 = vmatprep.subr.mxu1 %v159_v56  ;;  %s314_s25 = scalar_lea.vmem %s265_s24, 128  ;;  %p319_p1 = scmp.lt.s32.totalorder %s265_s24, %s265_s24 }
  0x24   :  { %296 = vmatpush3.msra.mxu1 %v143_v57  ;;  %p315_p0 = scmp.ne.s32.totalorder %s265_s24, %s314_s25  ;;  %p320_p2 = scmp.lt.s32.totalorder %s314_s25, %s314_s25 }
  0x25   :  { %297 = vmatprep.subr.mxu1 %v158_v58 }
  0x26   :  { %298 = vmatpush3.msra.mxu1 %v142_v59  ;;  %p321_p3 = por %p320_p2, %p319_p1 }
  0x27   :  { %299 = vmatprep.subr.mxu1 %v157_v60 }
  0x28   :  { %300 = vmatpush3.msra.mxu1 %v141_v61  ;;  %p322_p4 = pnand %p321_p3, %p315_p0 }
  0x29   :  { %301 = vmatprep.subr.mxu1 %v156_v62 }
  0x2a   :  { %302 = vmatpush3.msra.mxu1 %v140_v63 }
  0x2b   :  { %303 = vmatprep.subr.mxu1 %v155_v0 }
  0x2c   :  { %304 = vmatpush3.msra.mxu1 %v139_v1 }
  0xe2   :  { %v132_v9 = vpop.f32.mrf.mxu0 }
  0xe3   :  { %v133_v10 = vadd.f32 %v132_v9, %v59_v7 }
  0xe4   :  { %v134_v11 = vpop.f32.mrf.mxu0 }
  0xe5   :  { %v135_v12 = vadd.f32 %v134_v11, %v63_v8  ;;  %v137_v14 = vmax.f32 %v133_v10, 0.0 }
  0xe7   :  { %v138_v13 = vmax.f32 %v135_v12, 0.0 }
  0xe9   :  { %242 = vmatprep.mubr.f32.mxu1 %v138_v13 }
  0xea   :  { %243 = vmatmul.mubr.f32.vlgmr.msra.gmra.mxu1 %v137_v14 }
 0x1aa   :  { %v305_v15 = vpop.f32.mrf.mxu1 }
 0x1ac   :  { %v306_v16 = vpop.f32.mrf.mxu1 }
 0x1ad   :  { %v307_v18 = vadd.f32 %v306_v16, %v305_v15 }
 0x1af   :  { %v245_v19 = vadd.f32 %v307_v18, %v272_v17 }
 0x1b1   :  { %248 = vmax.xlane.f32.xlu0 %v245_v19 }
 0x23a   :  { %v249_v20 = vpop.xlane.xlu0 %248 }
 0x23b   :  { %v250_v21 = vsub.f32 %v245_v19, %v249_v20 }
 0x23d   :  { %v251_v22 = vmul.f32 1.442695, %v250_v21 }
 0x23f   :  { %310 = vpow2.f32 %v251_v22 }
 0x24c   :  { %v311_v23 = vpop.eup %310 }
 0x24d   :  { %253 = vadd.xlane.f32.xlu0 %v311_v23 }
 0x2d6   :  { %v254_v24 = vpop.xlane.xlu0 %253 }
 0x2d7   :  { %312 = vrcp.f32 %v254_v24 }
 0x2e4   :  { %v313_v25 = vpop.eup %312 }
 0x2e5   :  { %v256_v26 = vmul.f32 %v313_v25, %v311_v23 }
 0x2e7   :  { %257 = vst [vmem:[#allocation2] sm:$0xff] %v256_v26 }
 0x2e8   :  { %325 = shalt.err (!%p322_p4)
}
 0x2e9   :  { %267 = dma.vmem_to_hbm [thread:$0]  %s265_s24, 128, %s577_s5, [#allocation3]  }
 0x2ea   :  { %334 = dma.done.wait [#allocation3], 128  }
 0x2eb   :  { %335 = vsyncadd [#allocation3], 4294967168 }
 0x2ec   :  { %271 = vsyncpa [#allocation3], 1 }

</bundles_post_ra>
